<compile_context>
chip_gen: v6e
topology: v6e:2x2x1
jax: 0.10.0
libtpu: 0.0.40
codegen_flags: <defaults>
</compile_context>

<pallas_src>
import functools

import jax
import jax.numpy as jnp
from jax.experimental import pallas as pl
from jax.experimental.pallas import tpu as pltpu

BN_EPS = 1e-5
GATE_ROWS = 2      # pseudo / valid gate logits
GATE_PAD = 8       # gate rows padded to an f32 sublane boundary


# ---------------------------------------------------------------------------
# Kernel
# ---------------------------------------------------------------------------
def _caaf_kernel(p_ref, v_ref,
                 m1_ref, mb1_ref, m2_ref, mb2_ref,
                 wf_ref, bf_ref,
                 out_ref, *, bf16_elementwise):
    P = p_ref[0]                                   # (Cp, TN) channels x points
    V = v_ref[0]                                   # (Cv, TN)

    # One merged dot per input tile.  Rows [0:2] of the result are the gate
    # logits (fc3@fc1 / fc3@fc2 folded), rows [2:8] are zero padding, rows
    # [GATE_PAD:] are the attention conv (+folded BN).  f32 accumulation.
    r1 = (jnp.dot(m1_ref[...], P, preferred_element_type=jnp.float32)
          + mb1_ref[...])                          # (GATE_PAD + Cv, TN) f32
    r2 = (jnp.dot(m2_ref[...], V, preferred_element_type=jnp.float32)
          + mb2_ref[...])                          # (GATE_PAD + Cv, TN) f32

    # Gate: sigmoid kept in f32 (EUP); padded rows are exactly 0 -> harmless.
    gate = jax.nn.sigmoid(r1[0:GATE_PAD, :] + r2[0:GATE_PAD, :])   # (8, TN) f32

    feat_dtype = p_ref.dtype
    ew_dtype = (feat_dtype
                if (bf16_elementwise and feat_dtype == jnp.bfloat16)
                else jnp.float32)

    pseudo_w = gate[0:1, :].astype(ew_dtype)       # (1, TN)
    valid_w = gate[1:2, :].astype(ew_dtype)        # (1, TN)

    # ReLU + gate multiply in ew_dtype (bf16 on v6e/v7x halves VPU/vreg work).
    a_p = jnp.maximum(r1[GATE_PAD:, :].astype(ew_dtype), 0) * pseudo_w  # (Cv, TN)
    a_v = jnp.maximum(r2[GATE_PAD:, :].astype(ew_dtype), 0) * valid_w   # (Cv, TN)

    # Fusion conv as a single MXU dot on the concatenated tile
    # (torch: cat([valid_att, pseudo_att], dim=1)).
    fused = jnp.concatenate([a_v, a_p], axis=0).astype(wf_ref.dtype)    # (2Cv, TN)
    out = (jnp.dot(wf_ref[...], fused, preferred_element_type=jnp.float32)
           + bf_ref[...])                          # (Co, TN) f32
    out_ref[0, :, :] = jnp.maximum(out, 0.0).astype(out_ref.dtype)


# ---------------------------------------------------------------------------
# Host-side parameter construction and algebraic folding
# ---------------------------------------------------------------------------
def make_caaf_raw_params(key, pseudo_in, valid_in, outplanes):
    """Raw PyTorch-style params (channel-major weights, nontrivial BN stats)."""
    middle = valid_in // 4
    ks = jax.random.split(key, 24)

    def lin_w(k, out_c, in_c):
        return jax.random.normal(k, (out_c, in_c), jnp.float32) / jnp.sqrt(in_c)

    def vec(k, c, scale=1.0):
        return scale * jax.random.normal(k, (c,), jnp.float32)

    def pos(k, c):
        return jax.random.uniform(k, (c,), jnp.float32, minval=0.5, maxval=1.5)

    return dict(
        # Attention MLP
        w1=lin_w(ks[0], middle, pseudo_in), b1=vec(ks[1], middle, 0.1),
        w2=lin_w(ks[2], middle, valid_in), b2=vec(ks[3], middle, 0.1),
        w3=lin_w(ks[4], 2, 2 * middle), b3=vec(ks[5], 2, 0.1),
        # Attention conv1: Conv1d(pseudo_in -> valid_in, 1) + BN(valid_in)
        wc1=lin_w(ks[6], valid_in, pseudo_in), bc1=vec(ks[7], valid_in, 0.1),
        bn1_gamma=1.0 + 0.1 * vec(ks[8], valid_in), bn1_beta=vec(ks[9], valid_in, 0.1),
        bn1_mean=vec(ks[10], valid_in, 0.1), bn1_var=pos(ks[11], valid_in),
        # Attention conv2: Conv1d(valid_in -> valid_in, 1) + BN(valid_in)
        wc2=lin_w(ks[12], valid_in, valid_in), bc2=vec(ks[13], valid_in, 0.1),
        bn2_gamma=1.0 + 0.1 * vec(ks[14], valid_in), bn2_beta=vec(ks[15], valid_in, 0.1),
        bn2_mean=vec(ks[16], valid_in, 0.1), bn2_var=pos(ks[17], valid_in),
        # CAAF fusion: Conv1d(pseudo_in + valid_in -> outplanes, 1) + BN(outplanes)
        wf=lin_w(ks[18], outplanes, pseudo_in + valid_in), bf=vec(ks[19], outplanes, 0.1),
        bnf_gamma=1.0 + 0.1 * vec(ks[20], outplanes), bnf_beta=vec(ks[21], outplanes, 0.1),
        bnf_mean=vec(ks[22], outplanes, 0.1), bnf_var=pos(ks[23], outplanes),
    )


def _fold_bn(w, b, gamma, beta, mean, var, eps=BN_EPS):
    """Fold inference-mode BatchNorm1d into a preceding 1x1 conv (w: (Cout, Cin))."""
    scale = gamma / jnp.sqrt(var + eps)
    return w * scale[:, None], (b - mean) * scale + beta


def fold_caaf_params(raw):
    """Kernel-ready params: fc3 folded into fc1/fc2, gate rows padded to an
    8-row sublane boundary and stacked on top of the (BN-folded) conv weights.
    NOTE (bf16 path): folding is done in f32 and the merged weights are later
    cast to bf16, which compounds rounding ahead of the sigmoid; acceptable
    for inference, compare against a torch bf16 baseline if parity matters."""
    middle = raw["w1"].shape[0]
    w3a = raw["w3"][:, :middle]            # acts on fc1(pseudo) output
    w3b = raw["w3"][:, middle:]            # acts on fc2(valid) output
    wpl = w3a @ raw["w1"]                  # (2, Cp)
    wvl = w3b @ raw["w2"]                  # (2, Cv)
    bl = w3a @ raw["b1"] + w3b @ raw["b2"] + raw["b3"]           # (2,)

    wc1, bc1 = _fold_bn(raw["wc1"], raw["bc1"], raw["bn1_gamma"], raw["bn1_beta"],
                        raw["bn1_mean"], raw["bn1_var"])
    wc2, bc2 = _fold_bn(raw["wc2"], raw["bc2"], raw["bn2_gamma"], raw["bn2_beta"],
                        raw["bn2_mean"], raw["bn2_var"])
    wf, bf = _fold_bn(raw["wf"], raw["bf"], raw["bnf_gamma"], raw["bnf_beta"],
                      raw["bnf_mean"], raw["bnf_var"])

    cp = wc1.shape[1]
    cv = wc2.shape[1]
    pad = GATE_PAD - GATE_ROWS

    # Merged weights: [gate rows (2); zero pad (6); conv rows (Cv)].
    m1 = jnp.concatenate([wpl, jnp.zeros((pad, cp), jnp.float32), wc1], axis=0)
    m2 = jnp.concatenate([wvl, jnp.zeros((pad, cv), jnp.float32), wc2], axis=0)
    # Gate bias goes entirely into mb1 (added once when logits r1+r2 are summed).
    mb1 = jnp.concatenate([bl, jnp.zeros((pad,), jnp.float32), bc1], axis=0)
    mb2 = jnp.concatenate([jnp.zeros((GATE_PAD,), jnp.float32), bc2], axis=0)

    return dict(m1=m1, mb1=mb1.reshape(-1, 1),
                m2=m2, mb2=mb2.reshape(-1, 1),
                wf=wf, bf=bf.reshape(-1, 1))


# ---------------------------------------------------------------------------
# Wrapper
# ---------------------------------------------------------------------------
def _pick_point_tile(n_pad, batch, max_tile, min_steps=4):
    """Largest multiple-of-128 tile that divides n_pad and is <= max_tile,
    preferring tiles that keep the total grid >= min_steps steps (so both
    v7x TensorCores get multiple iterations)."""
    limit = max(128, min(max_tile, n_pad))
    cands = [t for t in range(128, limit + 1, 128) if n_pad % t == 0]
    if not cands:
        return n_pad                                # n_pad < 128 (never: we pad to 128)
    good = [t for t in cands if batch * (n_pad // t) >= min_steps]
    return max(good) if good else min(cands)


@functools.partial(jax.jit, static_argnames=("max_tile", "bf16_elementwise"))
def caaf_forward(pseudo_features, valid_features, kparams,
                 max_tile=4096, bf16_elementwise=True):
    """pseudo_features: (B, Cp, N), valid_features: (B, Cv, N) -> (B, outplanes, N).

    Native NCW layout throughout.  Works for f32 or bf16 features; matmul
    accumulation and the sigmoid stay f32.  Set bf16_elementwise=False on
    v5e (no bf16 VALU); bf16 features are still an HBM win there.
    """
    B, Cp, N = pseudo_features.shape
    _, Cv, _ = valid_features.shape
    Co = kparams["wf"].shape[0]
    dtype = pseudo_features.dtype

    # Pad the point axis to a multiple of 128 (zero points are harmless and
    # sliced off at the end) so we always use bounded, pipelined tiles.
    Np = ((N + 127) // 128) * 128
    if Np != N:
        pad = ((0, 0), (0, 0), (0, Np - N))
        pseudo_features = jnp.pad(pseudo_features, pad)
        valid_features = jnp.pad(valid_features, pad)
    tn = _pick_point_tile(Np, B, max_tile)

    # MXU weight operands follow the feature dtype (bf16 halves HBM I/O on
    # all generations); biases stay f32 since they feed f32 accumulators.
    m1 = kparams["m1"].astype(dtype)
    m2 = kparams["m2"].astype(dtype)
    wf = kparams["wf"].astype(dtype)
    mb1 = kparams["mb1"].astype(jnp.float32)
    mb2 = kparams["mb2"].astype(jnp.float32)
    bf = kparams["bf"].astype(jnp.float32)
    weights = [m1, mb1, m2, mb2, wf, bf]

    # Weights are KB-scale with a constant index_map (DMA'd once, resident).
    # If channel counts grow, consider pipeline_mode=pl.Buffered(1) here to
    # drop the second (unused) pipeline buffer for these constants.
    def full_spec(arr):
        return pl.BlockSpec(arr.shape, lambda b, j: (0,) * arr.ndim)

    kernel = functools.partial(_caaf_kernel, bf16_elementwise=bf16_elementwise)

    out = pl.pallas_call(
        kernel,
        out_shape=jax.ShapeDtypeStruct((B, Co, Np), dtype),
        grid_spec=pltpu.PrefetchScalarGridSpec(
            num_scalar_prefetch=0,
            grid=(B, Np // tn),
            in_specs=[
                pl.BlockSpec((1, Cp, tn), lambda b, j: (b, 0, j)),
                pl.BlockSpec((1, Cv, tn), lambda b, j: (b, 0, j)),
            ] + [full_spec(w) for w in weights],
            out_specs=pl.BlockSpec((1, Co, tn), lambda b, j: (b, 0, j)),
        ),
        compiler_params=pltpu.CompilerParams(
            dimension_semantics=("parallel", "parallel")),
    )(pseudo_features, valid_features, *weights)
    return out[:, :, :N] if Np != N else out


# ---------------------------------------------------------------------------
# Pure-JAX reference (mirrors the PyTorch forward, inference-mode BN)
# ---------------------------------------------------------------------------
def caaf_reference(pseudo, valid, raw, eps=BN_EPS):
    B, Cp, N = pseudo.shape
    Cv = valid.shape[1]
    Pf = jnp.transpose(pseudo, (0, 2, 1)).reshape(-1, Cp)
    Vf = jnp.transpose(valid, (0, 2, 1)).reshape(-1, Cv)
    h = jnp.concatenate([Pf @ raw["w1"].T + raw["b1"],
                         Vf @ raw["w2"].T + raw["b2"]], axis=-1)
    w = jax.nn.sigmoid(h @ raw["w3"].T + raw["b3"])          # (B*N, 2)
    pw = w[:, 0].reshape(B, 1, N)
    vw = w[:, 1].reshape(B, 1, N)

    def conv_bn_relu(x, W, b, g, bt, m, v):
        y = jnp.einsum("oc,bcn->bon", W, x) + b[None, :, None]
        y = (y - m[None, :, None]) * (g / jnp.sqrt(v + eps))[None, :, None] + bt[None, :, None]
        return jnp.maximum(y, 0.0)

    p_att = conv_bn_relu(pseudo, raw["wc1"], raw["bc1"], raw["bn1_gamma"],
                         raw["bn1_beta"], raw["bn1_mean"], raw["bn1_var"]) * pw
    v_att = conv_bn_relu(valid, raw["wc2"], raw["bc2"], raw["bn2_gamma"],
                         raw["bn2_beta"], raw["bn2_mean"], raw["bn2_var"]) * vw
    fusion = jnp.concatenate([v_att, p_att], axis=1)
    out = jnp.einsum("oc,bcn->bon", raw["wf"], fusion) + raw["bf"][None, :, None]
    out = ((out - raw["bnf_mean"][None, :, None])
           * (raw["bnf_gamma"] / jnp.sqrt(raw["bnf_var"] + eps))[None, :, None]
           + raw["bnf_beta"][None, :, None])
    return jnp.maximum(out, 0.0)


# ---------------------------------------------------------------------------
if __name__ == "__main__":
    # NOTE: the PyTorch CAAF only type-checks when pseudo_in == valid_in
    # (fusion has 2*valid_in channels but conv1 expects pseudo_in + valid_in).
    # N is deliberately NOT a multiple of 128 to exercise the pad/cdiv path.
    B, pseudo_in, valid_in, outplanes, N = 2, 16, 16, 32, 200

    key = jax.random.PRNGKey(0)
    k_par, k_p, k_v = jax.random.split(key, 3)
    raw = make_caaf_raw_params(k_par, pseudo_in, valid_in, outplanes)
    kparams = fold_caaf_params(raw)

    pseudo_features = jax.random.normal(k_p, (B, pseudo_in, N), jnp.float32)
    valid_features = jax.random.normal(k_v, (B, valid_in, N), jnp.float32)

    # f32 path
    out = caaf_forward(pseudo_features, valid_features, kparams)
    out = jax.block_until_ready(out)
    ref = caaf_reference(pseudo_features, valid_features, raw)
    assert out.shape == (B, outplanes, N)
    max_err = float(jnp.max(jnp.abs(out - ref)))
    assert jnp.allclose(out, ref, atol=1e-4, rtol=1e-4), f"f32 max err {max_err}"

    # bf16 I/O path (halves HBM bytes on all generations; f32 accumulate).
    p_bf = pseudo_features.astype(jnp.bfloat16)
    v_bf = valid_features.astype(jnp.bfloat16)
    ref_bf = caaf_reference(p_bf.astype(jnp.float32), v_bf.astype(jnp.float32), raw)

    out_bf = caaf_forward(p_bf, v_bf, kparams)                       # v6e/v7x: bf16 elementwise
    out_bf = jax.block_until_ready(out_bf)
    out_v5 = caaf_forward(p_bf, v_bf, kparams, bf16_elementwise=False)  # v5e: f32 elementwise
    out_v5 = jax.block_until_ready(out_v5)
    for o in (out_bf, out_v5):
        err = float(jnp.max(jnp.abs(o.astype(jnp.float32) - ref_bf)))
        assert jnp.allclose(o.astype(jnp.float32), ref_bf,
                            atol=0.2, rtol=0.1), f"bf16 max err {err}"

    print("KERNEL_OK")
</pallas_src>

<mosaic_0001>
module attributes {stable_mosaic.version = 11 : i64} {
  func.func @_caaf_kernel(%arg0: i32, %arg1: i32, %arg2: memref<1x16x128xf32, #tpu.memory_space<vmem>>, %arg3: memref<1x16x128xf32, #tpu.memory_space<vmem>>, %arg4: memref<24x16xf32, #tpu.memory_space<vmem>>, %arg5: memref<24x1xf32, #tpu.memory_space<vmem>>, %arg6: memref<24x16xf32, #tpu.memory_space<vmem>>, %arg7: memref<24x1xf32, #tpu.memory_space<vmem>>, %arg8: memref<32x32xf32, #tpu.memory_space<vmem>>, %arg9: memref<32x1xf32, #tpu.memory_space<vmem>>, %arg10: memref<1x32x128xf32, #tpu.memory_space<vmem>>) attributes {dimension_semantics = [#tpu.dimension_semantics<parallel>, #tpu.dimension_semantics<parallel>], iteration_bounds = array<i64: 2, 2>, scalar_prefetch = 0 : i64, scratch_operands = 0 : i64, tpu.core_type = #tpu.core_type<tc>, window_params = [{transform_indices = @transform_0, window_bounds = array<i64: 1, 16, 128>}, {transform_indices = @transform_1, window_bounds = array<i64: 1, 16, 128>}, {pipeline_mode = #tpu.pipeline_mode<synchronous>, transform_indices = @transform_2, window_bounds = array<i64: 24, 16>}, {pipeline_mode = #tpu.pipeline_mode<synchronous>, transform_indices = @transform_3, window_bounds = array<i64: 24, 1>}, {pipeline_mode = #tpu.pipeline_mode<synchronous>, transform_indices = @transform_4, window_bounds = array<i64: 24, 16>}, {pipeline_mode = #tpu.pipeline_mode<synchronous>, transform_indices = @transform_5, window_bounds = array<i64: 24, 1>}, {pipeline_mode = #tpu.pipeline_mode<synchronous>, transform_indices = @transform_6, window_bounds = array<i64: 32, 32>}, {pipeline_mode = #tpu.pipeline_mode<synchronous>, transform_indices = @transform_7, window_bounds = array<i64: 32, 1>}, {transform_indices = @transform_8, window_bounds = array<i64: 1, 32, 128>}]} {
    %c0 = arith.constant 0 : index
    %c0_0 = arith.constant 0 : index
    %c0_1 = arith.constant 0 : index
    %0 = vector.load %arg2[%c0, %c0_0, %c0_1] : memref<1x16x128xf32, #tpu.memory_space<vmem>>, vector<1x16x128xf32>
    %1 = vector.shape_cast %0 : vector<1x16x128xf32> to vector<16x128xf32>
    %c0_2 = arith.constant 0 : index
    %c0_3 = arith.constant 0 : index
    %c0_4 = arith.constant 0 : index
    %2 = vector.load %arg3[%c0_2, %c0_3, %c0_4] : memref<1x16x128xf32, #tpu.memory_space<vmem>>, vector<1x16x128xf32>
    %3 = vector.shape_cast %2 : vector<1x16x128xf32> to vector<16x128xf32>
    %c0_5 = arith.constant 0 : index
    %c0_6 = arith.constant 0 : index
    %4 = vector.load %arg4[%c0_5, %c0_6] : memref<24x16xf32, #tpu.memory_space<vmem>>, vector<24x16xf32>
    %cst = arith.constant dense<0.000000e+00> : vector<24x128xf32>
    %5 = tpu.matmul %4, %1, %cst {dimension_numbers = #tpu.dot_dimension_numbers<[1], [0], [0], [1], [0, 0, 1, 1], [], []>} : vector<24x16xf32>, vector<16x128xf32>, vector<24x128xf32> -> vector<24x128xf32>
    %c0_7 = arith.constant 0 : index
    %c0_8 = arith.constant 0 : index
    %6 = vector.load %arg5[%c0_7, %c0_8] : memref<24x1xf32, #tpu.memory_space<vmem>>, vector<24x1xf32>
    %7 = vector.broadcast %6 : vector<24x1xf32> to vector<24x128xf32>
    %8 = arith.addf %5, %7 : vector<24x128xf32>
    %c0_9 = arith.constant 0 : index
    %c0_10 = arith.constant 0 : index
    %9 = vector.load %arg6[%c0_9, %c0_10] : memref<24x16xf32, #tpu.memory_space<vmem>>, vector<24x16xf32>
    %cst_11 = arith.constant dense<0.000000e+00> : vector<24x128xf32>
    %10 = tpu.matmul %9, %3, %cst_11 {dimension_numbers = #tpu.dot_dimension_numbers<[1], [0], [0], [1], [0, 0, 1, 1], [], []>} : vector<24x16xf32>, vector<16x128xf32>, vector<24x128xf32> -> vector<24x128xf32>
    %c0_12 = arith.constant 0 : index
    %c0_13 = arith.constant 0 : index
    %11 = vector.load %arg7[%c0_12, %c0_13] : memref<24x1xf32, #tpu.memory_space<vmem>>, vector<24x1xf32>
    %12 = vector.broadcast %11 : vector<24x1xf32> to vector<24x128xf32>
    %13 = arith.addf %10, %12 : vector<24x128xf32>
    %14 = vector.extract_strided_slice %8 {offsets = [0, 0], sizes = [8, 128], strides = [1, 1]} : vector<24x128xf32> to vector<8x128xf32>
    %15 = vector.extract_strided_slice %13 {offsets = [0, 0], sizes = [8, 128], strides = [1, 1]} : vector<24x128xf32> to vector<8x128xf32>
    %16 = arith.addf %14, %15 : vector<8x128xf32>
    %17 = arith.negf %16 : vector<8x128xf32>
    %18 = math.exp %17 : vector<8x128xf32>
    %cst_14 = arith.constant 1.000000e+00 : f32
    %19 = vector.broadcast %cst_14 : f32 to vector<8x128xf32>
    %20 = arith.addf %19, %18 : vector<8x128xf32>
    %21 = arith.divf %19, %20 : vector<8x128xf32>
    %22 = vector.extract_strided_slice %21 {offsets = [0, 0], sizes = [1, 128], strides = [1, 1]} : vector<8x128xf32> to vector<1x128xf32>
    %23 = vector.extract_strided_slice %21 {offsets = [1, 0], sizes = [1, 128], strides = [1, 1]} : vector<8x128xf32> to vector<1x128xf32>
    %24 = vector.extract_strided_slice %8 {offsets = [8, 0], sizes = [16, 128], strides = [1, 1]} : vector<24x128xf32> to vector<16x128xf32>
    %cst_15 = arith.constant 0.000000e+00 : f32
    %25 = vector.broadcast %cst_15 : f32 to vector<16x128xf32>
    %26 = arith.maximumf %24, %25 : vector<16x128xf32>
    %27 = vector.broadcast %22 : vector<1x128xf32> to vector<16x128xf32>
    %28 = arith.mulf %26, %27 : vector<16x128xf32>
    %29 = vector.extract_strided_slice %13 {offsets = [8, 0], sizes = [16, 128], strides = [1, 1]} : vector<24x128xf32> to vector<16x128xf32>
    %cst_16 = arith.constant 0.000000e+00 : f32
    %30 = vector.broadcast %cst_16 : f32 to vector<16x128xf32>
    %31 = arith.maximumf %29, %30 : vector<16x128xf32>
    %32 = vector.broadcast %23 : vector<1x128xf32> to vector<16x128xf32>
    %33 = arith.mulf %31, %32 : vector<16x128xf32>
    %34 = tpu.concatenate %33, %28 in 0 : vector<16x128xf32>, vector<16x128xf32> -> vector<32x128xf32>
    %c0_17 = arith.constant 0 : index
    %c0_18 = arith.constant 0 : index
    %35 = vector.load %arg8[%c0_17, %c0_18] : memref<32x32xf32, #tpu.memory_space<vmem>>, vector<32x32xf32>
    %cst_19 = arith.constant dense<0.000000e+00> : vector<32x128xf32>
    %36 = tpu.matmul %35, %34, %cst_19 {dimension_numbers = #tpu.dot_dimension_numbers<[1], [0], [0], [1], [0, 0, 1, 1], [], []>} : vector<32x32xf32>, vector<32x128xf32>, vector<32x128xf32> -> vector<32x128xf32>
    %c0_20 = arith.constant 0 : index
    %c0_21 = arith.constant 0 : index
    %37 = vector.load %arg9[%c0_20, %c0_21] : memref<32x1xf32, #tpu.memory_space<vmem>>, vector<32x1xf32>
    %38 = vector.broadcast %37 : vector<32x1xf32> to vector<32x128xf32>
    %39 = arith.addf %36, %38 : vector<32x128xf32>
    %cst_22 = arith.constant 0.000000e+00 : f32
    %40 = vector.broadcast %cst_22 : f32 to vector<32x128xf32>
    %41 = arith.maximumf %39, %40 : vector<32x128xf32>
    %c0_23 = arith.constant 0 : index
    %c0_24 = arith.constant 0 : index
    %c0_25 = arith.constant 0 : index
    %42 = vector.load %arg10[%c0_23, %c0_24, %c0_25] : memref<1x32x128xf32, #tpu.memory_space<vmem>>, vector<1x32x128xf32>
    %43 = vector.shape_cast %42 : vector<1x32x128xf32> to vector<32x128xf32>
    %44 = vector.shape_cast %41 : vector<32x128xf32> to vector<1x32x128xf32>
    tpu.vector_store %arg10[%c0_23, %c0_24, %c0_25], %44 {strides = array<i32>} : memref<1x32x128xf32, #tpu.memory_space<vmem>>, vector<1x32x128xf32>,
    return
  }
  func.func @transform_0(%arg0: i32, %arg1: i32) -> (i32, i32, i32) {
    %c0_i32 = arith.constant 0 : i32
    %c0_i32_0 = arith.constant 0 : i32
    return %arg0, %c0_i32, %arg1 : i32, i32, i32
  }
  func.func @transform_1(%arg0: i32, %arg1: i32) -> (i32, i32, i32) {
    %c0_i32 = arith.constant 0 : i32
    %c0_i32_0 = arith.constant 0 : i32
    return %arg0, %c0_i32, %arg1 : i32, i32, i32
  }
  func.func @transform_2(%arg0: i32, %arg1: i32) -> (i32, i32) {
    %c0_i32 = arith.constant 0 : i32
    %c0_i32_0 = arith.constant 0 : i32
    %c0_i32_1 = arith.constant 0 : i32
    return %c0_i32, %c0_i32_0 : i32, i32
  }
  func.func @transform_3(%arg0: i32, %arg1: i32) -> (i32, i32) {
    %c0_i32 = arith.constant 0 : i32
    %c0_i32_0 = arith.constant 0 : i32
    %c0_i32_1 = arith.constant 0 : i32
    return %c0_i32, %c0_i32_0 : i32, i32
  }
  func.func @transform_4(%arg0: i32, %arg1: i32) -> (i32, i32) {
    %c0_i32 = arith.constant 0 : i32
    %c0_i32_0 = arith.constant 0 : i32
    %c0_i32_1 = arith.constant 0 : i32
    return %c0_i32, %c0_i32_0 : i32, i32
  }
  func.func @transform_5(%arg0: i32, %arg1: i32) -> (i32, i32) {
    %c0_i32 = arith.constant 0 : i32
    %c0_i32_0 = arith.constant 0 : i32
    %c0_i32_1 = arith.constant 0 : i32
    return %c0_i32, %c0_i32_0 : i32, i32
  }
  func.func @transform_6(%arg0: i32, %arg1: i32) -> (i32, i32) {
    %c0_i32 = arith.constant 0 : i32
    %c0_i32_0 = arith.constant 0 : i32
    %c0_i32_1 = arith.constant 0 : i32
    return %c0_i32, %c0_i32_0 : i32, i32
  }
  func.func @transform_7(%arg0: i32, %arg1: i32) -> (i32, i32) {
    %c0_i32 = arith.constant 0 : i32
    %c0_i32_0 = arith.constant 0 : i32
    %c0_i32_1 = arith.constant 0 : i32
    return %c0_i32, %c0_i32_0 : i32, i32
  }
  func.func @transform_8(%arg0: i32, %arg1: i32) -> (i32, i32, i32) {
    %c0_i32 = arith.constant 0 : i32
    %c0_i32_0 = arith.constant 0 : i32
    return %arg0, %c0_i32, %arg1 : i32, i32, i32
  }
}

</mosaic_0001>

<bundles_post_ra>
// kernel: caaf_forward.1
= control target key start
LH: loop header
LB: loop body
LE: loop exit
PB: predicated region body
PF: predicated region fallthrough
CT: control target
= control target key end

     0   :  { %13 = vsyncpa [#allocation5], 0  ;;  %s1479_s0 = inlined_call_operand.vmem [shape: f32[2,16,256], index: 0, kind: input, shape index: {}]   ;;  %s1480_s1 = inlined_call_operand.vmem [shape: f32[2,16,256], index: 1, kind: input, shape index: {}]   ;;  %s1481_s2 = inlined_call_operand.vmem [shape: f32[24,16], index: 2, kind: input, shape index: {}]   ;;  %s1482_s3 = inlined_call_operand.vmem [shape: f32[24,1], index: 3, kind: input, shape index: {}]   ;;  %s1483_s4 = inlined_call_operand.vmem [shape: f32[24,16], index: 4, kind: input, shape index: {}]   ;;  %s1484_s5 = inlined_call_operand.vmem [shape: f32[24,1], index: 5, kind: input, shape index: {}]   ;;  %s1485_s6 = inlined_call_operand.vmem [shape: f32[32,32], index: 6, kind: input, shape index: {}]   ;;  %s1486_s7 = inlined_call_operand.vmem [shape: f32[32,1], index: 7, kind: input, shape index: {}]   ;;  %s1487_s8 = inlined_call_operand.hbm [shape: f32[2,32,256], index: 8, kind: output, shape index: {}]  }
   0x1   :  { %15 = vsyncpa [#allocation5 + $0x1], 0  ;;  %s1245_s27 = smov 0   ;;  %s1247_s28 = smov 0  }
   0x2   :  { %s1249_s29 = smov 0   ;;  %s1251_s30 = smov 0  }
   0x3   :  { %s1253_s9 = smov 0   ;;  %s1255_s10 = smov 0  }
   0x4   :  { %s1257_s11 = smov 0   ;;  %s1259_s12 = smov 0  }
   0x5 LB: > { %s924_s13 = sadd.s32 4294967295, %s1191_s12   ;;  %s925_s14 = sadd.s32 4294967294, %s1191_s12   ;;  %s1191_s12 = sphi %s1259_s12, %s21_s12   ;;  %s1187_s11 = sphi %s1257_s11, %s1508_s11   ;;  %s1183_s10 = sphi %s1255_s10, %s1507_s10   ;;  %s1179_s9 = sphi %s1253_s9, %s1506_s9   ;;  %s1175_s30 = sphi %s1251_s30, %s1505_s30   ;;  %s1171_s29 = sphi %s1249_s29, %s1504_s29   ;;  %s1167_s28 = sphi %s1247_s28, %s1503_s28   ;;  %s1163_s27 = sphi %s1245_s27, %s1502_s27  }
   0x6   : > { %s30_s15 = sadd.s32 1, %s1183_s10  ;;  %s33_s16 = sadd.s32 1, %s1187_s11 }
   0x7   : > { %p31_p0 = scmp.ge.s32.totalorder %s30_s15, 2  ;;  %p49_p1 = scmp.ne.s32.totalorder %s1171_s29, %s1167_s28 }
   0x8   : > { %p50_p2 = scmp.eq.s32.totalorder %s1191_s12, 0  ;;  %p235_p5 = scmp.eq.s32.totalorder %s924_s13, 3 }
   0x9   : > { %s1510_s15 = smov (%p31_p0, %s30_s15), 0  ;;  %s1512_s16 = smov (!%p31_p0, %s33_s16), %s1187_s11 }
   0xa   : > { %1491 = sst [smem:[#allocation7_spill]] %s1510_s15  ;;  %s38_s17 = ssub.s32 %s1183_s10, %s1510_s15 }
   0xb   : > { %p1297_p3 = por %p50_p2, %p49_p1  ;;  %p35_p4 = scmp.ge.s32.totalorder %s1512_s16, 2 }
   0xc   : > { %p240_p6 = scmp.ne.s32.totalorder %s1167_s28, %s1163_s27  ;;  %p241_p7 = scmp.eq.s32.totalorder %s925_s14, 3 }
   0xd   : > { %s1514_s16 = smov (%p35_p4, %s1512_s16), 0  ;;  %p1305_p8 = por %p235_p5, %p49_p1 }
   0xe   : > { %1493 = sst [smem:[#allocation8_spill]] %s1514_s16  ;;  %p1309_p9 = por %p241_p7, %p240_p6 }
   0xf   : > { %s37_s21 = ssub.s32 %s1187_s11, %s1514_s16  ;;  %s42_s23 = sadd.s32 1, %s1171_s29 }
  0x10   : > { %s1495_s20 = scalar_select %p1309_p9, 1, 0 }
  0x11   : > { %s39_s22 = sor.u32 %s38_s17, %s37_s21  ;;  %p927_p11 = scmp.ge.s32.totalorder %s1191_s12, 4 }
  0x12   : > { %1496 = sst [smem:[#allocation9_spill]] %s1495_s20  ;;  %p40_p10 = scmp.eq.s32.totalorder %s39_s22, 0 }
  0x13   : > { %275 = sbr.rel (%p927_p11) target bundleno = 38 (0x26), region = 40 }
  0x14   : > { %s1317_s24 = scalar_select %p40_p10, %s1171_s29, %s42_s23  }
  0x16   : > { %1497 = sst [smem:[#allocation10_spill]] %s1317_s24 }
  0x18   : > { %278 = sbr.rel (!%p1297_p3) target bundleno = 31 (0x1f), region = 44  ;;  %s280_s25 = sand.u32 (%p1297_p3), 1, %s1171_s29  }
  0x19   : > { %s929_s26 = sshll.u32 (%p1297_p3), %s1187_s11, 2  ;;  %s928_s13 = sshll.u32 (%p1297_p3), %s280_s25, 4 }
  0x1a   : > { %s284_s14 = sadd.s32 (%p1297_p3), %s1183_s10, %s929_s26  ;;  %s282_s22 = scalar_lea.vmem (%p1297_p3), [#allocation2], %s928_s13 }
  0x1b   : > { %s930_s15 = sshll.u32 (%p1297_p3), %s284_s14, 3 }
  0x1c   : > { %s286_s21 = scalar_lea.vmem (%p1297_p3), %s1479_s0, %s930_s15 }
  0x1d   : > { %v317_v0 = vld [vmem:[%s286_s21] sm:$0xff]  ;;  %v319_v1 = vld [vmem:[%s286_s21 + $0x10] sm:$0xff] }
  0x1e   : > { %318 = vst [vmem:[%s282_s22] sm:$0xff] %v317_v0  ;;  %320 = vst [vmem:[%s282_s22 + $0x8] sm:$0xff] %v319_v1 }
  0x1f PF: > { %326 = sbr.rel (!%p1297_p3) target bundleno = 38 (0x26), region = 82  ;;  %s328_s23 = sand.u32 (%p1297_p3), 1, %s1171_s29  }
  0x20   : > { %s932_s25 = sshll.u32 (%p1297_p3), %s1187_s11, 2  ;;  %s931_s26 = sshll.u32 (%p1297_p3), %s328_s23, 4 }
  0x21   : > { %s332_s14 = sadd.s32 (%p1297_p3), %s1183_s10, %s932_s25  ;;  %s330_s13 = scalar_lea.vmem (%p1297_p3), [#allocation3], %s931_s26 }
  0x22   : > { %s933_s24 = sshll.u32 (%p1297_p3), %s332_s14, 3 }
  0x23   : > { %s334_s15 = scalar_lea.vmem (%p1297_p3), %s1480_s1, %s933_s24 }
  0x24   : > { %v365_v2 = vld [vmem:[%s334_s15] sm:$0xff]  ;;  %v367_v3 = vld [vmem:[%s334_s15 + $0x10] sm:$0xff] }
  0x25   : > { %366 = vst [vmem:[%s330_s13] sm:$0xff] %v365_v2  ;;  %368 = vst [vmem:[%s330_s13 + $0x8] sm:$0xff] %v367_v3 }
  0x26 PF: > { %p934_p12 = scmp.ge.s32.totalorder %s1191_s12, 1  ;;  %p373_p13 = scmp.lt.s32.totalorder %s1191_s12, 5 }
  0x28   : > { %p374_p0 = pnand %p934_p12, %p373_p13 }
  0x29   : > { %s1339_s18 = sand.u32 (!%p374_p0), 1, %s1167_s28   ;;  %s950_s14 = sshll.u32 (!%p374_p0), %s1179_s9, 3 }
  0x2a   : > { %377 = sbr.rel (%p374_p0) target bundleno = 518 (0x206), region = 120  ;;  %s935_s20 = sshll.u32 (!%p374_p0), %s1339_s18, 4 }
  0x2b   : > { %s382_s24 = scalar_lea.vmem (!%p374_p0), [#allocation2], %s935_s20  ;;  %s389_s25 = scalar_lea.vmem (!%p374_p0), [#allocation3], %s935_s20 }
  0x2c   : > { %s937_s26 = sshll.u32 (!%p374_p0), %s1339_s18, 5  ;;  %s818_s16 = sadd.s32 (!%p374_p0), %s1175_s30, %s950_s14 }
  0x2d   : > { %s423_s15 = scalar_lea.vmem (!%p374_p0), [#allocation4], %s937_s26  ;;  %s951_s20 = sshll.u32 (!%p374_p0), %s818_s16, 7 }
  0x2e   : > { %s821_s13 = sshll.u32 (!%p374_p0), %s423_s15, 4  ;;  %s807_s17 = scalar_lea.sflag (!%p374_p0), [#allocation5], %s1339_s18  ;;  %s1421_s13 = int_to_ptr.vmem [resolvable:$true] %s821_s13 }
  0x2f   : > { %v1193_v4 = vmov 0.0   ;;  %vm1194_vm0 = vmmov 0   ;;  %v425_v5 = vld [vmem:[%s382_s24 + $0x8] sm:$0xff]  ;;  %v424_v6 = vld [vmem:[%s382_s24] sm:$0xff]  ;;  %v1195_v7 = vmov 0   ;;  %vm449_vm1 = vcmask 130048   ;;  %s1426_s24 = scalar_lea.hbm %s1487_s8, %s951_s20 }
  0x30   : > { %972 = vmatprep.subr.mxu0 %v1193_v4  ;;  %1012 = vmatprep.subr.mxu1 %v1193_v4  ;;  %v428_v8 = vld [vmem:[%s1481_s2] sm:$0xff]  ;;  %v430_v9 = vld [vmem:[%s1481_s2 + $0x10] sm:$0xff]  ;;  %v427_v10 = vld [vmem:[%s389_s25 + $0x8] sm:$0xff]  ;;  %vm700_vm2 = vcmask 261120   ;;  %v658_v47 = vlaneseq  ;;  %s1099_s21 = scalar_lea.vmem %s1421_s13, 512  ;;  %s1196_s22 = smov [#allocation4]  }
  0x31   : > { %976 = vmatprep.mubr.msk.f32.mxu0 %vm1194_vm0, %v1193_v4  ;;  %982 = vmatprep.mubr.msk.f32.mxu1 %vm1194_vm0, %v1193_v4  ;;  %v431_v11 = vld [vmem:[%s1482_s3] sm:$0xff]  ;;  %v429_v13 = vld [vmem:[%s1481_s2 + $0x8] sm:$0xff]  ;;  %v433_v15 = vld [vmem:[%s1482_s3 + $0x10] sm:$0xff]  ;;  %p1100_p1 = scmp.ne.s32.totalorder %s1421_s13, %s1099_s21  ;;  %s1103_s23 = sshll.u32 %s1196_s22, 4  ;;  %s1104_s23 = int_to_ptr.vmem [resolvable:$false] %s1103_s23 }
  0x32   : > { %1093 = vset.pattern.permute.xlu0 %v1195_v7  ;;  %1094 = vset.pattern.permute.xlu1 %v1195_v7  ;;  %v426_v12 = vld [vmem:[%s389_s25] sm:$0xff]  ;;  %v540_v17 = vld [vmem:[%s1483_s4 + $0x8] sm:$0xff]  ;;  %v679_v25 = vld [vmem:[%s1486_s7 + $0x18] sm:$0xff]  ;;  %v659_v49 = vshrl.u32 %v658_v47, 7  ;;  %s1105_s25 = scalar_lea.vmem %s1104_s23, 1024  ;;  %p1106_p4 = scmp.lt.s32.totalorder %s1421_s13, %s1104_s23 }
  0x33   : > { %973 = vmatpush3.msra.mxu0 %v425_v5  ;;  %1014 = vmatpush3.msra.mxu1 %v425_v5  ;;  %v539_v14 = vld [vmem:[%s1483_s4] sm:$0xff]  ;;  %v432_v18 = vld [vmem:[%s1482_s3 + $0x8] sm:$0xff]  ;;  %v544_v19 = vld [vmem:[%s1484_s5 + $0x10] sm:$0xff]  ;;  %p1101_p2 = pnand %p1100_p1, %p1305_p8  ;;  %p1107_p5 = scmp.lt.s32.totalorder %s1105_s25, %s1099_s21 }
  0x34   : > { %974 = vmatprep.subr.mxu0 %v1193_v4  ;;  %1013 = vmatprep.subr.mxu1 %v1193_v4  ;;  %v542_v16 = vld [vmem:[%s1484_s5] sm:$0xff]  ;;  %v541_v20 = vld [vmem:[%s1483_s4 + $0x10] sm:$0xff]  ;;  %v543_v21 = vld [vmem:[%s1484_s5 + $0x8] sm:$0xff]  ;;  %v660_v52 = vsub.s32 0, %v659_v49  ;;  %v668_v53 = vsub.s32 1, %v659_v49 }
  0x35   : > { %975 = vmatpush3.msra.mxu0 %v424_v6  ;;  %1015 = vmatpush3.msra.mxu1 %v424_v6  ;;  %v676_v22 = vld [vmem:[%s1486_s7] sm:$0xff]  ;;  %v677_v23 = vld [vmem:[%s1486_s7 + $0x8] sm:$0xff]  ;;  %v678_v24 = vld [vmem:[%s1486_s7 + $0x10] sm:$0xff]  ;;  %p1102_p3 = pneg %p1101_p2  ;;  %p1108_p6 = por %p1107_p5, %p1106_p4 }
  0x36   : > { %977 = vmatmul.mubr.msk.f32.vlgmr.msra.gmra.mxu0 %vm449_vm1, %v428_v8  ;;  %983 = vmatmul.mubr.msk.f32.vlgmr.msra.gmra.mxu1 %vm449_vm1, %v430_v9  ;;  %v672_v26 = vld [vmem:[%s1485_s6] sm:$0xff]  ;;  %v673_v6 = vld [vmem:[%s1485_s6 + $0x8] sm:$0xff]  ;;  %v674_v7 = vld [vmem:[%s1485_s6 + $0x10] sm:$0xff] }
  0x37   : > { %985 = vmatprep.subr.mxu1 %v1193_v4  ;;  %989 = vmatprep.mubr.msk.f32.mxu1 %vm1194_vm0, %v1193_v4  ;;  %v675_v8 = vld [vmem:[%s1485_s6 + $0x18] sm:$0xff]  ;;  %p1109_p7 = pnand %p1108_p6, %p1102_p3 }
  0x38   : > { %986 = vmatpush3.msra.mxu1 %v427_v10  ;;  %979 = vmatprep.mubr.msk.f32.mxu0 %vm1194_vm0, %v1193_v4 }
  0x39   : > { %987 = vmatprep.subr.mxu1 %v1193_v4  ;;  %436 = vperm.xlu0 %1093, %v431_v11  }
  0x3a   : > { %988 = vmatpush3.msra.mxu1 %v426_v12  ;;  %980 = vmatmul.mubr.msk.f32.gmra.mxu0 %vm449_vm1, %v429_v13 }
  0x3b   : > { %990 = vmatmul.mubr.msk.f32.vlgmr.msra.gmra.mxu1 %vm449_vm1, %v539_v14  ;;  %446 = vperm.xlu1 %1094, %v433_v15  }
  0x3c   : > { %992 = vmatprep.mubr.msk.f32.mxu1 %vm1194_vm0, %v1193_v4  ;;  %1006 = vmatprep.mubr.msk.f32.mxu0 %vm700_vm2, %v672_v26 }
  0x3d   : > { %547 = vperm.xlu0 %1093, %v542_v16  }
  0x3f   : > { %993 = vmatmul.mubr.msk.f32.gmra.mxu1 %vm449_vm1, %v540_v17  ;;  %441 = vperm.xlu1 %1094, %v432_v18  }
  0x40   : > { %995 = vmatprep.mubr.msk.f32.mxu1 %vm1194_vm0, %v1193_v4 }
  0x41   : > { %557 = vperm.xlu0 %1093, %v544_v19  }
  0x43   : > { %996 = vmatmul.mubr.msk.f32.gmra.mxu1 %vm449_vm1, %v541_v20  ;;  %552 = vperm.xlu1 %1094, %v543_v21  }
  0x45   : > { %682 = vperm.xlu0 %1093, %v676_v22  }
  0x47   : > { %687 = vperm.xlu1 %1094, %v677_v23  }
  0x49   : > { %692 = vperm.xlu0 %1093, %v678_v24  }
  0x4b   : > { %697 = vperm.xlu1 %1094, %v679_v25  }
  0xb4   : > { %v437_v27 = vpop.permute.xlu0 %436 }
  0xb6   : > { %v447_v48 = vpop.permute.xlu1 %446 }
  0xb8   : > { %v548_v33 = vpop.permute.xlu0 %547 }
  0xba   : > { %v442_v50 = vpop.permute.xlu1 %441 }
  0xbc   : > { %v558_v56 = vpop.permute.xlu0 %557 }
  0xbe   : > { %v553_v60 = vpop.permute.xlu1 %552 }
  0xc0   : > { %v683_v10 = vpop.permute.xlu0 %682 }
  0xc2   : > { %v688_v9 = vpop.permute.xlu1 %687 }
  0xc4   : > { %v693_v20 = vpop.permute.xlu0 %692 }
  0xc6   : > { %v698_v16 = vpop.permute.xlu1 %697 }
  0xf6   : > { %v525_v28 = vpop.f32.mrf.mxu0  ;;  %v535_v29 = vpop.f32.mrf.mxu1 }
  0xf7   : > { %v526_v35 = vadd.f32 %v525_v28, %v437_v27  ;;  %v536_v51 = vadd.f32 %v535_v29, %v447_v48 }
  0xf8   : > { %v984_v30 = vpop.f32.mrf.mxu1  ;;  %v978_v31 = vpop.f32.mrf.mxu0 }
  0xf9   : > { %v657_v57 = vmax.f32 %v536_v51, 0.0 }
  0xfa   : > { %v530_v32 = vpop.f32.mrf.mxu0 }
  0xfb   : > { %v635_v34 = vpop.f32.mrf.mxu1  ;;  %v531_v54 = vadd.f32 %v530_v32, %v442_v50 }
  0xfc   : > { %v636_v36 = vadd.f32 %v635_v34, %v548_v33  ;;  %v981_v37 = vpop.f32.mrf.mxu0 }
  0xfd   : > { %v991_v38 = vpop.f32.mrf.mxu1  ;;  %v656_v63 = vmax.f32 %v531_v54, 0.0 }
  0xfe   : > { %v649_v39 = vadd.f32 %v636_v36, %v526_v35 }
  0xff   : > { %v640_v40 = vpop.f32.mrf.mxu1 }
 0x100   : > { %v944_v41 = vmul.f32 -1.442695, %v649_v39  ;;  %v641_v62 = vadd.f32 %v640_v40, %v553_v60 }
 0x101   : > { %v994_v42 = vpop.f32.mrf.mxu1 }
 0x102   : > { %1095 = vpow2.f32 %v944_v41  ;;  %v664_v4 = vmax.f32 %v641_v62, 0.0 }
 0x103   : > { %v645_v43 = vpop.f32.mrf.mxu1 }
 0x104   : > { %v646_v58 = vadd.f32 %v645_v43, %v558_v56 }
 0x105   : > { %v997_v44 = vpop.f32.mrf.mxu1 }
 0x106   : > { %v665_v1 = vmax.f32 %v646_v58, 0.0 }
 0x10f   : > { %v1096_v45 = vpop.eup %1095 }
 0x110   : > { %v653_v46 = vadd.f32 1.0, %v1096_v45 }
 0x112   : > { %1097 = vrcp.f32 %v653_v46 }
 0x11f   : > { %v1098_v55 = vpop.eup %1097 }
 0x120   : > { %v661_v59 = vrot.slane %v1098_v55, %v660_v52  ;;  %v669_v61 = vrot.slane %v1098_v55, %v668_v53 }
 0x122   : > { %v663_v0 = vmul.f32 %v661_v59, %v657_v57  ;;  %v662_v2 = vmul.f32 %v661_v59, %v656_v63  ;;  %v671_v3 = vmul.f32 %v669_v61, %v665_v1  ;;  %v670_v5 = vmul.f32 %v669_v61, %v664_v4 }
 0x124   : > { %998 = vmatprep.subr.mxu0 %v663_v0 }
 0x125   : > { %999 = vmatpush3.msra.mxu0 %v663_v0 }
 0x126   : > { %1000 = vmatprep.subr.mxu0 %v662_v2 }
 0x127   : > { %1001 = vmatpush3.msra.mxu0 %v662_v2 }
 0x128   : > { %1002 = vmatprep.subr.mxu0 %v671_v3 }
 0x129   : > { %1003 = vmatpush3.msra.mxu0 %v671_v3 }
 0x12a   : > { %1004 = vmatprep.subr.mxu0 %v670_v5 }
 0x12b   : > { %1005 = vmatpush3.msra.mxu0 %v670_v5 }
 0x12c   : > { %1007 = vmatmul.mubr.msk.f32.vlgmr.msra.gmra.mxu0 %vm700_vm2, %v673_v6 }
 0x12d   : > { %1009 = vmatprep.mubr.msk.f32.mxu0 %vm700_vm2, %v674_v7 }
 0x130   : > { %1010 = vmatmul.mubr.msk.f32.gmra.mxu0 %vm700_vm2, %v675_v8 }
 0x1ec   : > { %v1008_v11 = vpop.f32.mrf.mxu0 }
 0x1ed   : > { %v785_v12 = vadd.f32 %v1008_v11, %v688_v9 }
 0x1ee   : > { %v779_v13 = vpop.f32.mrf.mxu0 }
 0x1ef   : > { %v799_v14 = vmax.f32 %v785_v12, 0.0  ;;  %v780_v15 = vadd.f32 %v779_v13, %v683_v10 }
 0x1f0   : > { %v1011_v17 = vpop.f32.mrf.mxu0 }
 0x1f1   : > { %803 = vst [vmem:[%s423_s15 + $0x8] sm:$0xff] %v799_v14  ;;  %v798_v18 = vmax.f32 %v780_v15, 0.0  ;;  %v795_v19 = vadd.f32 %v1011_v17, %v698_v16 }
 0x1f2   : > { %v789_v21 = vpop.f32.mrf.mxu0 }
 0x1f3   : > { %802 = vst [vmem:[%s423_s15] sm:$0xff] %v798_v18  ;;  %v801_v22 = vmax.f32 %v795_v19, 0.0  ;;  %v790_v23 = vadd.f32 %v789_v21, %v693_v20 }
 0x1f5   : > { %805 = vst [vmem:[%s423_s15 + $0x18] sm:$0xff] %v801_v22  ;;  %v800_v24 = vmax.f32 %v790_v23, 0.0 }
 0x1f7   : > { %804 = vst [vmem:[%s423_s15 + $0x10] sm:$0xff] %v800_v24 }
 0x1f8   : > { %1112 = shalt.err (!%p1109_p7)
}
 0x1f9   : > { %s1113_s26 = scalar_lea.hbm %s1426_s24, 512  ;;  %s1117_s15 = scalar_lea.hbm %s1487_s8, 2048 }
 0x1fa   : > { %p1114_p10 = scmp.ne.s32.totalorder %s1426_s24, %s1113_s26  ;;  %p1118_p13 = scmp.lt.s32.totalorder %s1426_s24, %s1487_s8 }
 0x1fb   : > { %p1119_p0 = scmp.lt.s32.totalorder %s1117_s15, %s1113_s26 }
 0x1fc   : > { %p1115_p11 = pnand %p1114_p10, %p1305_p8 }
 0x1fd   : > { %p1120_p1 = por %p1119_p0, %p1118_p13 }
 0x1fe   : > { %p1116_p12 = pneg %p1115_p11 }
 0x200   : > { %p1121_p2 = pnand %p1120_p1, %p1116_p12 }
 0x202   : > { %1124 = shalt.err (!%p1121_p2)
}
 0x203   : > { %s1197_s9 = smov 128   ;;  %s1198_s21 = smov 256  }
 0x204   : > { %s1199_s22 = smov 8  }
 0x205   : > { %1016 = dma.vmem_to_hbm [thread:$0]  (%p1305_p8), %s1421_s13, 512, %s1426_s24, %s807_s17, %s1197_s9, %s1198_s21, %s1199_s22  }
 0x206 PF: > { %p1022_p3 = scmp.ge.s32.totalorder %s1191_s12, 2  ;;  %s836_s25 = sand.u32 1, %s1163_s27  }
 0x207   : > { %s837_s26 = scalar_lea.sflag [#allocation5], %s836_s25 }
 0x208   : > { %p1019_p4 = pnand %p1022_p3, %p1309_p9 }
 0x20a   : > { %p1020_p5 = pneg %p1019_p4 }
 0x20c   : > { %1158 = dma.done.wait (%p1020_p5), %s837_s26, 512  }
 0x20d   : > { %1160 = vsyncadd (%p1020_p5), %s837_s26, 4294966784  ;;  %s21_s12 = sadd.s32 1, %s1191_s12   ;;  %s1499_s19 = sld [smem:[#allocation10_spill]] }
 0x20e   : > { %p18_p6 = scmp.ge.s32.totalorder %s21_s12, 6   ;;  %s1500_s18 = sld [smem:[#allocation7_spill]] }
 0x20f   : > { %s1501_s13 = sld [smem:[#allocation8_spill]]  ;;  %s1502_s27 = smov %s1167_s28 }
 0x210   : > { %s1503_s28 = smov %s1171_s29  ;;  %s1505_s30 = smov %s1183_s10 }
 0x211   : > { %s1506_s9 = smov %s1187_s11  ;;  %20 = sbr.rel (!%p18_p6) target bundleno = 5 (0x5), region = 176 }
 0x213   : > { %s1504_s29 = smov %s1499_s19 }
 0x214   : > { %s1507_s10 = smov %s1500_s18 }
 0x215   : > { %s1508_s11 = smov %s1501_s13 }
 0x216   :  { %842 = vsyncpa [#allocation5], 1 }
 0x217   :  { %844 = vsyncpa [#allocation5 + $0x1], 1 }

</bundles_post_ra>
